<compile_context>
chip_gen: v5e
topology: v5e:2x2
jax: 0.10.0
libtpu: 0.0.40
codegen_flags: <defaults>
</compile_context>

<pallas_src>
import functools

import jax
import jax.numpy as jnp
from jax.experimental import pallas as pl
from jax.experimental.pallas import tpu as pltpu


LANE = 128      # TPU lane width: the batch lives on this axis inside the kernel
SUBLANE = 8


def _round_up(x, m):
    return ((x + m - 1) // m) * m


def actor_kernel(xt_ref, w1t_ref, w2t_ref, wht_ref, bt_ref, bht_ref, out_ref,
                 *, h1_dim, h2_dim):
    """One batch tile (batch on the lane axis).

    bf16 MXU matmuls with f32 accumulation; bias-add / relu / softplus in f32.
    """
    xt = xt_ref[...]                                             # (S, Tb) bf16

    # trunk: Linear -> relu -> Linear -> relu   (transposed: h^T = W^T @ x^T + b)
    h = jnp.dot(w1t_ref[...], xt, preferred_element_type=jnp.float32)
    h = jnp.maximum(h + bt_ref[:h1_dim, 0:1], 0.0)               # (H1, Tb) f32
    h = jnp.dot(w2t_ref[...], h.astype(jnp.bfloat16),
                preferred_element_type=jnp.float32)
    h = jnp.maximum(h + bt_ref[:h2_dim, 1:2], 0.0)               # (H2, Tb) f32

    # fused heads: rows = [alpha | beta | zero-pad to 8 sublanes]
    z = jnp.dot(wht_ref[...], h.astype(jnp.bfloat16),
                preferred_element_type=jnp.float32) + bht_ref[...]
    out_ref[...] = 1.0 + jnp.logaddexp(z, 0.0)                   # 1 + softplus(z)


def init_params(key, input_dim, fc1_dims, fc2_dims, n_actions):
    """nn.Linear-style uniform init, JAX [in, out] weight layout (f32 master)."""
    dims = [
        ("fc1", input_dim, fc1_dims),
        ("fc2", fc1_dims, fc2_dims),
        ("alpha", fc2_dims, n_actions),
        ("beta", fc2_dims, n_actions),
    ]
    params = {}
    for name, fan_in, fan_out in dims:
        key, kw, kb = jax.random.split(key, 3)
        bound = 1.0 / jnp.sqrt(fan_in)
        params[name + "_w"] = jax.random.uniform(
            kw, (fan_in, fan_out), jnp.float32, -bound, bound)
        params[name + "_b"] = jax.random.uniform(
            kb, (1, fan_out), jnp.float32, -bound, bound)
    return params


def pack_params(params, n_actions):
    """One-time packing: transpose weights for the batch-on-lanes kernel, cast
    them to bf16, fuse the two heads, and stack the trunk biases."""
    S, H1 = params["fc1_w"].shape
    H2 = params["fc2_w"].shape[1]
    A = n_actions
    HPr = _round_up(2 * A, SUBLANE)          # fused head rows (sublane-padded)
    Hmax = max(H1, H2)

    w1t = params["fc1_w"].T.astype(jnp.bfloat16)                  # (H1, S)
    w2t = params["fc2_w"].T.astype(jnp.bfloat16)                  # (H2, H1)

    wh = jnp.concatenate([params["alpha_w"], params["beta_w"]], axis=1)   # (H2, 2A)
    wht = jnp.pad(wh.T, ((0, HPr - 2 * A), (0, 0))).astype(jnp.bfloat16)  # (HPr, H2)

    bh = jnp.concatenate([params["alpha_b"], params["beta_b"]], axis=1)[0]
    bht = jnp.pad(bh, (0, HPr - 2 * A)).reshape(HPr, 1).astype(jnp.float32)

    bt = jnp.zeros((Hmax, 2), jnp.float32)          # column 0 = fc1_b, 1 = fc2_b
    bt = bt.at[:H1, 0].set(params["fc1_b"][0])
    bt = bt.at[:H2, 1].set(params["fc2_b"][0])

    return {
        "w1t": w1t, "w2t": w2t, "wht": wht, "bt": bt, "bht": bht,
        "meta": {"S": S, "H1": H1, "H2": H2, "HPr": HPr, "Hmax": Hmax, "A": A},
    }


def _plan_batch(B0, batch_tile):
    """Padded batch (lane axis) and per-step tile.

    Always >= 2 grid steps so both TensorCores run on v7x; tiles are lane-dense
    (multiples of 128) so every block satisfies the (8, 128) constraint."""
    batch_tile = max(LANE, (batch_tile // LANE) * LANE)
    Bp = _round_up(max(B0, 2 * LANE), LANE)
    if Bp <= 2 * batch_tile:
        Bp = _round_up(Bp, 2 * LANE)
        return Bp, Bp // 2
    Bp = _round_up(Bp, batch_tile)
    return Bp, batch_tile


def actor_forward(state, packed, *, batch_tile=2048):
    """Returns (alpha, beta), each [B, n_actions] float32."""
    B0, S = state.shape
    m = packed["meta"]
    H1, H2, HPr, Hmax, A = m["H1"], m["H2"], m["HPr"], m["Hmax"], m["A"]
    assert S == m["S"]

    Bp, tile = _plan_batch(B0, batch_tile)
    if Bp != B0:
        state = jnp.pad(state, ((0, Bp - B0), (0, 0)))
    xt = state.T.astype(jnp.bfloat16)        # (S, Bp): batch on the lane axis

    grid = (Bp // tile,)
    kernel = functools.partial(actor_kernel, h1_dim=H1, h2_dim=H2)

    resident = pl.Buffered(1)   # constant index_map -> one resident buffer only

    flops = 2 * Bp * (S * H1 + H1 * H2 + H2 * HPr)
    transcendentals = 2 * Bp * HPr              # exp + log per computed softplus
    bytes_accessed = (2 * (Bp * S + S * H1 + H1 * H2 + H2 * HPr)   # bf16 tensors
                      + 4 * (2 * Hmax + HPr + HPr * Bp))           # f32 biases+out

    out = pl.pallas_call(
        kernel,
        out_shape=jax.ShapeDtypeStruct((HPr, Bp), jnp.float32),
        grid=grid,
        in_specs=[
            pl.BlockSpec((S, tile), lambda i: (0, i)),                  # state^T
            pl.BlockSpec((H1, S), lambda i: (0, 0), pipeline_mode=resident),
            pl.BlockSpec((H2, H1), lambda i: (0, 0), pipeline_mode=resident),
            pl.BlockSpec((HPr, H2), lambda i: (0, 0), pipeline_mode=resident),
            pl.BlockSpec((Hmax, 2), lambda i: (0, 0), pipeline_mode=resident),
            pl.BlockSpec((HPr, 1), lambda i: (0, 0), pipeline_mode=resident),
        ],
        out_specs=pl.BlockSpec((HPr, tile), lambda i: (0, i)),
        compiler_params=pltpu.CompilerParams(
            dimension_semantics=("parallel",)),
        cost_estimate=pl.CostEstimate(
            flops=flops,
            transcendentals=transcendentals,
            bytes_accessed=bytes_accessed),
    )(xt, packed["w1t"], packed["w2t"], packed["wht"], packed["bt"],
      packed["bht"])

    probs = out[:2 * A, :B0].T               # drop pad rows/cols, back to row-major
    return probs[:, :A], probs[:, A:]


def _reference_forward(state, params):
    """Pure-JAX f32 reference mirroring the PyTorch forward exactly."""
    h = jnp.maximum(state @ params["fc1_w"] + params["fc1_b"], 0.0)
    h = jnp.maximum(h @ params["fc2_w"] + params["fc2_b"], 0.0)
    alpha = 1.0 + jnp.logaddexp(h @ params["alpha_w"] + params["alpha_b"], 0.0)
    beta = 1.0 + jnp.logaddexp(h @ params["beta_w"] + params["beta_b"], 0.0)
    return alpha, beta


if __name__ == "__main__":
    B = 8            # batch
    STATE_DIM = 8    # input_dims[0]
    FC1_DIMS = 128   # lane-dense hidden widths
    FC2_DIMS = 128
    N_ACTIONS = 2

    key = jax.random.PRNGKey(0)
    kp, ks = jax.random.split(key)

    params = init_params(kp, STATE_DIM, FC1_DIMS, FC2_DIMS, N_ACTIONS)
    packed = pack_params(params, N_ACTIONS)
    state = jax.random.normal(ks, (B, STATE_DIM), jnp.float32)

    alpha, beta = actor_forward(state, packed)
    jax.block_until_ready((alpha, beta))

    alpha_r, beta_r = _reference_forward(state, params)
    # bf16 weights/activations in the matmuls -> loosened tolerance vs the exact
    # f32 reference (per review: keep f32 asserts only for an f32 build).
    assert alpha.shape == (B, N_ACTIONS) and beta.shape == (B, N_ACTIONS)
    assert jnp.allclose(alpha, alpha_r, atol=5e-2, rtol=5e-2), "alpha mismatch"
    assert jnp.allclose(beta, beta_r, atol=5e-2, rtol=5e-2), "beta mismatch"

    # TODO(synk): sample_beta (Beta-distribution sampling / log_prob), Adam
    # optimizer and checkpoint I/O are outside forward() and not kernelized.
    print("KERNEL_OK")
</pallas_src>

<mosaic_0001>
module attributes {stable_mosaic.version = 11 : i64} {
  func.func @actor_kernel(%arg0: i32, %arg1: memref<8x128xbf16, #tpu.memory_space<vmem>>, %arg2: memref<128x8xbf16, #tpu.memory_space<vmem>>, %arg3: memref<128x128xbf16, #tpu.memory_space<vmem>>, %arg4: memref<8x128xbf16, #tpu.memory_space<vmem>>, %arg5: memref<128x2xf32, #tpu.memory_space<vmem>>, %arg6: memref<8x1xf32, #tpu.memory_space<vmem>>, %arg7: memref<8x128xf32, #tpu.memory_space<vmem>>) attributes {dimension_semantics = [#tpu.dimension_semantics<parallel>], iteration_bounds = array<i64: 2>, scalar_prefetch = 0 : i64, scratch_operands = 0 : i64, tpu.core_type = #tpu.core_type<tc>, window_params = [{transform_indices = @transform_0, window_bounds = array<i64: 8, 128>}, {pipeline_mode = #tpu.pipeline_mode<synchronous>, transform_indices = @transform_1, window_bounds = array<i64: 128, 8>}, {pipeline_mode = #tpu.pipeline_mode<synchronous>, transform_indices = @transform_2, window_bounds = array<i64: 128, 128>}, {pipeline_mode = #tpu.pipeline_mode<synchronous>, transform_indices = @transform_3, window_bounds = array<i64: 8, 128>}, {pipeline_mode = #tpu.pipeline_mode<synchronous>, transform_indices = @transform_4, window_bounds = array<i64: 128, 2>}, {pipeline_mode = #tpu.pipeline_mode<synchronous>, transform_indices = @transform_5, window_bounds = array<i64: 8, 1>}, {transform_indices = @transform_6, window_bounds = array<i64: 8, 128>}]} {
    %c0 = arith.constant 0 : index
    %c0_0 = arith.constant 0 : index
    %0 = vector.load %arg1[%c0, %c0_0] : memref<8x128xbf16, #tpu.memory_space<vmem>>, vector<8x128xbf16>
    %c0_1 = arith.constant 0 : index
    %c0_2 = arith.constant 0 : index
    %1 = vector.load %arg2[%c0_1, %c0_2] : memref<128x8xbf16, #tpu.memory_space<vmem>>, vector<128x8xbf16>
    %cst = arith.constant dense<0.000000e+00> : vector<128x128xf32>
    %2 = tpu.matmul %1, %0, %cst {dimension_numbers = #tpu.dot_dimension_numbers<[1], [0], [0], [1], [0, 0, 1, 1], [], []>} : vector<128x8xbf16>, vector<8x128xbf16>, vector<128x128xf32> -> vector<128x128xf32>
    %c0_3 = arith.constant 0 : index
    %c0_4 = arith.constant 0 : index
    %3 = vector.load %arg5[%c0_3, %c0_4] : memref<128x2xf32, #tpu.memory_space<vmem>>, vector<128x1xf32>
    %4 = vector.broadcast %3 : vector<128x1xf32> to vector<128x128xf32>
    %5 = arith.addf %2, %4 : vector<128x128xf32>
    %cst_5 = arith.constant 0.000000e+00 : f32
    %6 = vector.broadcast %cst_5 : f32 to vector<128x128xf32>
    %7 = arith.maximumf %5, %6 : vector<128x128xf32>
    %c0_6 = arith.constant 0 : index
    %c0_7 = arith.constant 0 : index
    %8 = vector.load %arg3[%c0_6, %c0_7] : memref<128x128xbf16, #tpu.memory_space<vmem>>, vector<128x128xbf16>
    %9 = arith.truncf %7 : vector<128x128xf32> to vector<128x128xbf16>
    %cst_8 = arith.constant dense<0.000000e+00> : vector<128x128xf32>
    %10 = tpu.matmul %8, %9, %cst_8 {dimension_numbers = #tpu.dot_dimension_numbers<[1], [0], [0], [1], [0, 0, 1, 1], [], []>} : vector<128x128xbf16>, vector<128x128xbf16>, vector<128x128xf32> -> vector<128x128xf32>
    %c0_9 = arith.constant 0 : index
    %c1 = arith.constant 1 : index
    %11 = vector.load %arg5[%c0_9, %c1] : memref<128x2xf32, #tpu.memory_space<vmem>>, vector<128x1xf32>
    %12 = vector.broadcast %11 : vector<128x1xf32> to vector<128x128xf32>
    %13 = arith.addf %10, %12 : vector<128x128xf32>
    %cst_10 = arith.constant 0.000000e+00 : f32
    %14 = vector.broadcast %cst_10 : f32 to vector<128x128xf32>
    %15 = arith.maximumf %13, %14 : vector<128x128xf32>
    %c0_11 = arith.constant 0 : index
    %c0_12 = arith.constant 0 : index
    %16 = vector.load %arg4[%c0_11, %c0_12] : memref<8x128xbf16, #tpu.memory_space<vmem>>, vector<8x128xbf16>
    %17 = arith.truncf %15 : vector<128x128xf32> to vector<128x128xbf16>
    %cst_13 = arith.constant dense<0.000000e+00> : vector<8x128xf32>
    %18 = tpu.matmul %16, %17, %cst_13 {dimension_numbers = #tpu.dot_dimension_numbers<[1], [0], [0], [1], [0, 0, 1, 1], [], []>} : vector<8x128xbf16>, vector<128x128xbf16>, vector<8x128xf32> -> vector<8x128xf32>
    %c0_14 = arith.constant 0 : index
    %c0_15 = arith.constant 0 : index
    %19 = vector.load %arg6[%c0_14, %c0_15] : memref<8x1xf32, #tpu.memory_space<vmem>>, vector<8x1xf32>
    %20 = vector.broadcast %19 : vector<8x1xf32> to vector<8x128xf32>
    %21 = arith.addf %18, %20 : vector<8x128xf32>
    %cst_16 = arith.constant 0.000000e+00 : f32
    %22 = vector.broadcast %cst_16 : f32 to vector<8x128xf32>
    %23 = arith.maximumf %21, %22 : vector<8x128xf32>
    %24 = vector.broadcast %cst_16 : f32 to vector<8x128xf32>
    %25 = arith.subf %21, %24 : vector<8x128xf32>
    %26 = arith.cmpf one, %25, %25 : vector<8x128xf32>
    %27 = vector.broadcast %cst_16 : f32 to vector<8x128xf32>
    %28 = arith.addf %21, %27 : vector<8x128xf32>
    %29 = math.absf %25 : vector<8x128xf32>
    %cst_17 = arith.constant 0.000000e+00 : f32
    %30 = vector.broadcast %cst_17 : f32 to vector<8x128xf32>
    %31 = arith.subf %30, %29 : vector<8x128xf32>
    %32 = math.exp %31 : vector<8x128xf32>
    %33 = math.log1p %32 : vector<8x128xf32>
    %34 = arith.addf %23, %33 : vector<8x128xf32>
    %35 = arith.select %26, %28, %34 : vector<8x128xi1>, vector<8x128xf32>
    %cst_18 = arith.constant 1.000000e+00 : f32
    %36 = vector.broadcast %cst_18 : f32 to vector<8x128xf32>
    %37 = arith.addf %36, %35 : vector<8x128xf32>
    %c0_19 = arith.constant 0 : index
    %c0_20 = arith.constant 0 : index
    %38 = vector.load %arg7[%c0_19, %c0_20] : memref<8x128xf32, #tpu.memory_space<vmem>>, vector<8x128xf32>
    tpu.vector_store %arg7[%c0_19, %c0_20], %37 {strides = array<i32>} : memref<8x128xf32, #tpu.memory_space<vmem>>, vector<8x128xf32>,
    return
  }
  func.func @transform_0(%arg0: i32) -> (i32, i32) {
    %c0_i32 = arith.constant 0 : i32
    %c0_i32_0 = arith.constant 0 : i32
    return %c0_i32, %arg0 : i32, i32
  }
  func.func @transform_1(%arg0: i32) -> (i32, i32) {
    %c0_i32 = arith.constant 0 : i32
    %c0_i32_0 = arith.constant 0 : i32
    %c0_i32_1 = arith.constant 0 : i32
    return %c0_i32, %c0_i32_0 : i32, i32
  }
  func.func @transform_2(%arg0: i32) -> (i32, i32) {
    %c0_i32 = arith.constant 0 : i32
    %c0_i32_0 = arith.constant 0 : i32
    %c0_i32_1 = arith.constant 0 : i32
    return %c0_i32, %c0_i32_0 : i32, i32
  }
  func.func @transform_3(%arg0: i32) -> (i32, i32) {
    %c0_i32 = arith.constant 0 : i32
    %c0_i32_0 = arith.constant 0 : i32
    %c0_i32_1 = arith.constant 0 : i32
    return %c0_i32, %c0_i32_0 : i32, i32
  }
  func.func @transform_4(%arg0: i32) -> (i32, i32) {
    %c0_i32 = arith.constant 0 : i32
    %c0_i32_0 = arith.constant 0 : i32
    %c0_i32_1 = arith.constant 0 : i32
    return %c0_i32, %c0_i32_0 : i32, i32
  }
  func.func @transform_5(%arg0: i32) -> (i32, i32) {
    %c0_i32 = arith.constant 0 : i32
    %c0_i32_0 = arith.constant 0 : i32
    %c0_i32_1 = arith.constant 0 : i32
    return %c0_i32, %c0_i32_0 : i32, i32
  }
  func.func @transform_6(%arg0: i32) -> (i32, i32) {
    %c0_i32 = arith.constant 0 : i32
    %c0_i32_0 = arith.constant 0 : i32
    return %c0_i32, %arg0 : i32, i32
  }
}

</mosaic_0001>

<bundles_post_ra>
// kernel: tpu_custom_call.1
= control target key start
LH: loop header
LB: loop body
LE: loop exit
PB: predicated region body
PF: predicated region fallthrough
CT: control target
= control target key end

     0   :  { %11 = vsyncpa [#allocation3], 0  ;;  %s1371_s0 = inlined_call_operand.vmem [shape: bf16[8,256], index: 0, kind: input, shape index: {}]   ;;  %s1372_s1 = inlined_call_operand.vmem [shape: bf16[128,8], index: 1, kind: input, shape index: {}]   ;;  %s1373_s2 = inlined_call_operand.vmem [shape: bf16[128,128], index: 2, kind: input, shape index: {}]   ;;  %s1374_s3 = inlined_call_operand.vmem [shape: bf16[8,128], index: 3, kind: input, shape index: {}]   ;;  %s1375_s4 = inlined_call_operand.vmem [shape: f32[128,2], index: 4, kind: input, shape index: {}]   ;;  %s1376_s5 = inlined_call_operand.vmem [shape: f32[8,1], index: 5, kind: input, shape index: {}]   ;;  %s1377_s6 = inlined_call_operand.hbm [shape: f32[8,256], index: 6, kind: output, shape index: {}]  }
   0x1   :  { %13 = vsyncpa [#allocation3 + $0x1], 0  ;;  %s1079_s21 = smov 0   ;;  %s1081_s22 = smov 0  }
   0x2   :  { %s1083_s23 = smov 0   ;;  %s1085_s24 = smov 0  }
   0x3 LB: > { %s1100_s25 = sadd.s32 4294967295, %s1040_s24   ;;  %s819_s26 = sadd.s32 4294967294, %s1040_s24   ;;  %s1040_s24 = sphi %s1085_s24, %s1383_s24   ;;  %s1036_s23 = sphi %s1083_s23, %s1382_s23   ;;  %s1032_s22 = sphi %s1081_s22, %s1381_s22   ;;  %s1028_s21 = sphi %s1079_s21, %s1380_s21  }
   0x4   : > { %s1104_s27 = sadd.s32 1, %s1040_s24   ;;  %s157_s28 = sadd.s32 1, %s1036_s23 }
   0x5   : > { %s154_s29 = ssub.s32 %s1040_s24, %s1104_s27  ;;  %p167_p0 = scmp.ne.s32.totalorder %s1036_s23, %s1032_s22 }
   0x6   : > { %p155_p1 = scmp.eq.s32.totalorder %s154_s29, 0  ;;  %p168_p2 = scmp.eq.s32.totalorder %s1100_s25, 1 }
   0x7   : > { %p173_p3 = scmp.ne.s32.totalorder %s1032_s22, %s1028_s21  ;;  %p174_p4 = scmp.eq.s32.totalorder %s819_s26, 1 }
   0x8   : > { %s1115_s30 = scalar_select %p155_p1, %s1036_s23, %s157_s28  }
   0x9   : > { %p1117_p5 = por %p168_p2, %p167_p0  ;;  %p1121_p6 = por %p174_p4, %p173_p3 }
   0xa   : > { %p822_p7 = scmp.ge.s32.totalorder %s1040_s24, 1  ;;  %p214_p8 = scmp.lt.s32.totalorder %s1040_s24, 3 }
   0xc   : > { %p215_p9 = pnand %p822_p7, %p214_p8 }
   0xd   : > { %p243_p10 = scmp.lt.s32.totalorder (!%p215_p9), %s1100_s25, 1  ;;  %s240_s28 = sand.u32 (!%p215_p9), 1, %s1032_s22  }
   0xe   : > { %218 = sbr.rel (%p215_p9) target bundleno = 663 (0x297), region = 44  ;;  %s823_s29 = sshll.u32 (!%p215_p9), %s240_s28, 3 }
   0xf   : > { %s898_s9 = sshll.u32 (!%p215_p9), %s1100_s25, 3  ;;  %s242_s13 = scalar_lea.vmem (!%p215_p9), [#allocation2], %s823_s29 }
  0x10   : > { %s755_s12 = scalar_lea.hbm (!%p215_p9), %s1377_s6, %s898_s9  ;;  %s757_s14 = sshll.u32 (!%p215_p9), %s242_s13, 4  ;;  %s758_s14 = int_to_ptr.vmem [resolvable:$true] %s757_s14 }
  0x11   : > { %s998_s20 = scalar_lea.hbm (!%p215_p9), %s1377_s6, 16 }
  0x13   : > { %v1130_v0 = vld [vmem:[%s1375_s4 + $0x70] sm:$0xff]  ;;  %v1042_v1 = vmov 0   ;;  %v1138_v2 = vld [vmem:[%s1375_s4 + $0x60] sm:$0xff]  ;;  %s244_s15 = scalar_select %p243_p10, %s1100_s25, 1  ;;  %vm426_vm0 = vcmask 1043456   ;;  %v1156_v6 = vld [vmem:[%s1375_s4 + $0x78] sm:$0xff] }
  0x14   : > { %967 = vset.pattern.permute.xlu0 %v1042_v1  ;;  %969 = vset.pattern.permute.xlu2 %v1042_v1  ;;  %v1143_v3 = vld [vmem:[%s1375_s4 + $0x50] sm:$0xff]  ;;  %v901_v7 = vld [vmem:[%s1372_s1] sm:$0xff]  ;;  %vm401_vm1 = vcmask 64512   ;;  %v1164_v8 = vld [vmem:[%s1375_s4 + $0x68] sm:$0xff]  ;;  %s745_s25 = scalar_lea.sflag [#allocation3], %s240_s28 }
  0x15   : > { %353 = vperm.xlu0 %967, %v1130_v0   ;;  %968 = vset.pattern.permute.xlu1 %v1042_v1  ;;  %s824_s16 = sshll.u32 %s244_s15, 2  ;;  %v907_v9 = vld [vmem:[%s1372_s1 + $0x30] sm:$0xff]  ;;  %v1172_v10 = vld [vmem:[%s1375_s4 + $0x58] sm:$0xff]  ;;  %v1182_v11 = vld [vmem:[%s1375_s4 + $0x40] sm:$0xff]  ;;  %s759_s15 = sshll.u32 %s755_s12, 4  ;;  %s760_s15 = int_to_ptr.hbm [resolvable:$true] %s759_s15 }
  0x16   : > { %343 = vperm.xlu1 %968, %v1138_v2   ;;  %333 = vperm.xlu2 %969, %v1143_v3   ;;  %s246_s19 = scalar_lea.vmem %s1371_s0, %s824_s16  ;;  %v1187_v12 = vld [vmem:[%s1375_s4 + $0x48] sm:$0xff]  ;;  %v1192_v13 = vld [vmem:[%s1375_s4 + $0x30] sm:$0xff]  ;;  %v1200_v14 = vld [vmem:[%s1375_s4 + $0x38] sm:$0xff]  ;;  %s992_s16 = sshra.s32 %s760_s15, 4  ;;  %s993_s16 = int_to_ptr.hbm [resolvable:$true] %s992_s16 }
  0x17   : > { %v248_v4 = vld [vmem:[%s246_s19] sm:$0xf]  ;;  %v902_v15 = vld [vmem:[%s1372_s1 + $0x8] sm:$0xff]  ;;  %v908_v17 = vld [vmem:[%s1372_s1 + $0x38] sm:$0xff]  ;;  %s994_s17 = scalar_lea.hbm %s993_s16, 8  ;;  %p999_p0 = scmp.lt.s32.totalorder %s993_s16, %s1377_s6 }
  0x18   : > { %v428_v5 = vsel %vm426_vm0, %v248_v4, 0  ;;  %v1208_v16 = vld [vmem:[%s1375_s4 + $0x20] sm:$0xff]  ;;  %v1216_v18 = vld [vmem:[%s1375_s4 + $0x28] sm:$0xff]  ;;  %v1226_v19 = vld [vmem:[%s1375_s4 + $0x10] sm:$0xff]  ;;  %p995_p11 = scmp.ne.s32.totalorder %s993_s16, %s994_s17  ;;  %p1000_p1 = scmp.lt.s32.totalorder %s998_s20, %s994_s17 }
  0x19   : > { %437 = vmatpush.bf16.msra.mxu0 %v428_v5  ;;  %917 = vmatpush.bf16.msra.mxu2 %v428_v5  ;;  %v1231_v20 = vld [vmem:[%s1375_s4 + $0x18] sm:$0xff]  ;;  %v1236_v21 = vld [vmem:[%s1375_s4] sm:$0xff]  ;;  %v1244_v22 = vld [vmem:[%s1375_s4 + $0x8] sm:$0xff] }
  0x1a   : > { %v903_v23 = vld [vmem:[%s1372_s1 + $0x10] sm:$0xff]  ;;  %v904_v24 = vld [vmem:[%s1372_s1 + $0x18] sm:$0xff]  ;;  %v905_v25 = vld [vmem:[%s1372_s1 + $0x20] sm:$0xff]  ;;  %p996_p12 = pnand %p995_p11, %p1117_p5  ;;  %p1001_p2 = por %p1000_p1, %p999_p0 }
  0x1b   : > { %v906_v26 = vld [vmem:[%s1372_s1 + $0x28] sm:$0xff] }
  0x1c   : > { %857 = vmatmul.msk.bf16.vlgmr.msra.gmra.mxu0 %vm401_vm1, %v901_v7  ;;  %863 = vmatmul.msk.bf16.vlgmr.msra.gmra.mxu2 %vm401_vm1, %v907_v9  ;;  %p997_p13 = pneg %p996_p12 }
  0x1d   : > { %358 = vperm.xlu0 %967, %v1156_v6  }
  0x1e   : > { %348 = vperm.xlu1 %968, %v1164_v8   ;;  %338 = vperm.xlu2 %969, %v1172_v10   ;;  %p1002_p3 = pnand %p1001_p2, %p997_p13 }
  0x25   : > { %323 = vperm.xlu0 %967, %v1182_v11  }
  0x26   : > { %328 = vperm.xlu1 %968, %v1187_v12   ;;  %313 = vperm.xlu2 %969, %v1192_v13  }
  0x2c   : > { %858 = vmatmul.msk.bf16.gmra.mxu0 %vm401_vm1, %v902_v15  ;;  %864 = vmatmul.msk.bf16.gmra.mxu2 %vm401_vm1, %v908_v17 }
  0x2d   : > { %318 = vperm.xlu0 %967, %v1200_v14  }
  0x2e   : > { %303 = vperm.xlu1 %968, %v1208_v16   ;;  %308 = vperm.xlu2 %969, %v1216_v18  }
  0x35   : > { %293 = vperm.xlu0 %967, %v1226_v19  }
  0x36   : > { %298 = vperm.xlu1 %968, %v1231_v20   ;;  %283 = vperm.xlu2 %969, %v1236_v21  }
  0x3c   : > { %859 = vmatmul.msk.bf16.gmra.mxu0 %vm401_vm1, %v903_v23 }
  0x3d   : > { %288 = vperm.xlu0 %967, %v1244_v22  }
  0x4c   : > { %860 = vmatmul.msk.bf16.gmra.mxu0 %vm401_vm1, %v904_v24 }
  0x5c   : > { %861 = vmatmul.msk.bf16.gmra.mxu0 %vm401_vm1, %v905_v25 }
  0x6c   : > { %862 = vmatmul.msk.bf16.gmra.mxu0 %vm401_vm1, %v906_v26 }
  0x70   : > { %v1263_v27 = vpop.permute.xlu2 %333 }
  0x78   : > { %v1265_v30 = vpop.permute.xlu2 %338 }
  0x80   : > { %v1267_v33 = vpop.permute.xlu2 %313 }
  0x87   : > { %v354_v28 = vpop.permute.xlu0 %353 }
  0x88   : > { %v344_v29 = vpop.permute.xlu1 %343  ;;  %v1269_v38 = vpop.permute.xlu2 %308 }
  0x8f   : > { %v359_v31 = vpop.permute.xlu0 %358 }
  0x90   : > { %v349_v32 = vpop.permute.xlu1 %348  ;;  %v284_v44 = vpop.permute.xlu2 %283 }
  0x97   : > { %v324_v34 = vpop.permute.xlu0 %323 }
  0x98   : > { %v329_v36 = vpop.permute.xlu1 %328 }
  0x99   : > { %v439_v35 = vpop.f32.mrf.mxu0 }
  0x9a   : > { %v440_v46 = vadd.f32 %v439_v35, %v284_v44 }
  0x9c   : > { %v479_v50 = vmax.f32 %v440_v46, 0.0 }
  0x9f   : > { %v319_v37 = vpop.permute.xlu0 %318  ;;  %v469_v39 = vpop.f32.mrf.mxu2 }
  0xa0   : > { %v1271_v42 = vpop.permute.xlu1 %303  ;;  %v470_v61 = vadd.f32 %v469_v39, %v344_v29  ;;  %v1043_v29 = vmov 1  }
  0xa1   : > { %v441_v40 = vpop.f32.mrf.mxu0  ;;  %970 = vset.pattern.permute.xlu1 %v1043_v29  ;;  %972 = vset.pattern.permute.xlu0 %v1043_v29 }
  0xa2   : > { %v491_v9 = vmax.f32 %v470_v61, 0.0  ;;  %576 = vperm.xlu1 %970, %v1130_v0   ;;  %971 = vset.pattern.permute.xlu2 %v1043_v29 }
  0xa3   : > { %568 = vperm.xlu0 %972, %v1138_v2   ;;  %580 = vperm.xlu2 %971, %v1156_v6  }
  0xa7   : > { %v294_v41 = vpop.permute.xlu0 %293  ;;  %v471_v43 = vpop.f32.mrf.mxu2 }
  0xa8   : > { %v299_v49 = vpop.permute.xlu1 %298  ;;  %v472_v62 = vadd.f32 %v471_v43, %v349_v32 }
  0xa9   : > { %v444_v45 = vpop.f32.mrf.mxu0 }
  0xaa   : > { %v445_v51 = vadd.f32 %v444_v45, %v294_v41  ;;  %v492_v15 = vmax.f32 %v472_v62, 0.0  ;;  %572 = vperm.xlu1 %970, %v1164_v8  }
  0xab   : > { %556 = vperm.xlu0 %972, %v1187_v12   ;;  %560 = vperm.xlu2 %971, %v1143_v3  }
  0xac   : > { %v481_v57 = vmax.f32 %v445_v51, 0.0  ;;  %v517_v24 = vpack.c.bf16 %v492_v15, %v491_v9 }
  0xaf   : > { %v289_v47 = vpop.permute.xlu0 %288  ;;  %v474_v53 = vpop.f32.mrf.mxu2 }
  0xb0   : > { %v442_v48 = vadd.f32 %v441_v40, %v289_v47  ;;  %v475_v59 = vadd.f32 %v474_v53, %v354_v28 }
  0xb1   : > { %v446_v54 = vpop.f32.mrf.mxu0 }
  0xb2   : > { %v480_v52 = vmax.f32 %v442_v48, 0.0  ;;  %v447_v55 = vadd.f32 %v446_v54, %v299_v49  ;;  %v493_v5 = vmax.f32 %v475_v59, 0.0  ;;  %564 = vperm.xlu1 %970, %v1172_v10  }
  0xb3   : > { %552 = vperm.xlu2 %971, %v1182_v11   ;;  %536 = vperm.xlu0 %972, %v1208_v16  }
  0xb4   : > { %v1273_v56 = vpack.c.bf16 %v480_v52, %v479_v50  ;;  %v482_v58 = vmax.f32 %v447_v55, 0.0 }
  0xb6   : > { %v1275_v60 = vpack.c.bf16 %v482_v58, %v481_v57 }
  0xb7   : > { %v476_v63 = vpop.f32.mrf.mxu2 }
  0xb8   : > { %v477_v7 = vadd.f32 %v476_v63, %v359_v31 }
  0xb9   : > { %v449_v4 = vpop.f32.mrf.mxu0 }
  0xba   : > { %v494_v17 = vmax.f32 %v477_v7, 0.0  ;;  %544 = vperm.xlu1 %970, %v1192_v13   ;;  %v909_v13 = vld [vmem:[%s1373_s2] sm:$0xff] }
  0xbb   : > { %548 = vperm.xlu2 %971, %v1200_v14   ;;  %532 = vperm.xlu0 %972, %v1231_v20   ;;  %v913_v14 = vld [vmem:[%s1373_s2 + $0x20] sm:$0xff]  ;;  %v915_v20 = vld [vmem:[%s1373_s2 + $0x30] sm:$0xff] }
  0xbc   : > { %v518_v23 = vpack.c.bf16 %v494_v17, %v493_v5 }
  0xbe   : > { %631 = vmatpush.bf16.msra.mxu1 %v518_v23  ;;  %918 = vmatpush.bf16.msra.mxu3 %v518_v23 }
  0xc1   : > { %v451_v25 = vpop.f32.mrf.mxu0 }
  0xc2   : > { %632 = vmatpush.bf16.msra.mxu1 %v517_v24  ;;  %919 = vmatpush.bf16.msra.mxu3 %v517_v24  ;;  %v452_v8 = vadd.f32 %v451_v25, %v1269_v38 }
  0xc3   : > { %540 = vperm.xlu1 %970, %v1216_v18   ;;  %528 = vperm.xlu2 %971, %v1226_v19   ;;  %v914_v18 = vld [vmem:[%s1373_s2 + $0x28] sm:$0xff]  ;;  %v911_v19 = vld [vmem:[%s1373_s2 + $0x10] sm:$0xff] }
  0xc4   : > { %973 = vset.pattern.permute.xlu0 %v1042_v1  ;;  %v910_v1 = vld [vmem:[%s1373_s2 + $0x8] sm:$0xff] }
  0xc9   : > { %v454_v26 = vpop.f32.mrf.mxu0 }
  0xca   : > { %v455_v3 = vadd.f32 %v454_v26, %v1267_v33 }
  0xcb   : > { %520 = vperm.xlu1 %970, %v1236_v21   ;;  %524 = vperm.xlu2 %971, %v1244_v22   ;;  %v912_v21 = vld [vmem:[%s1373_s2 + $0x18] sm:$0xff] }
  0xcc   : > { %v916_v22 = vld [vmem:[%s1373_s2 + $0x38] sm:$0xff] }
  0xd1   : > { %v456_v28 = vpop.f32.mrf.mxu0 }
  0xd2   : > { %v457_v46 = vadd.f32 %v456_v28, %v319_v37 }
  0xd4   : > { %v486_v12 = vmax.f32 %v457_v46, 0.0 }
  0xd9   : > { %v459_v35 = vpop.f32.mrf.mxu0 }
  0xda   : > { %v460_v44 = vadd.f32 %v459_v35, %v324_v34  ;;  %v485_v34 = vmax.f32 %v455_v3, 0.0 }
  0xdc   : > { %v487_v6 = vmax.f32 %v460_v44, 0.0  ;;  %v514_v10 = vpack.c.bf16 %v486_v12, %v485_v34 }
  0xe1   : > { %v461_v40 = vpop.f32.mrf.mxu0 }
  0xe2   : > { %v462_v41 = vadd.f32 %v461_v40, %v329_v36  ;;  %v484_v36 = vmax.f32 %v452_v8, 0.0 }
  0xe4   : > { %v488_v2 = vmax.f32 %v462_v41, 0.0 }
  0xe9   : > { %v464_v31 = vpop.f32.mrf.mxu0 }
  0xea   : > { %v465_v32 = vadd.f32 %v464_v31, %v1263_v27  ;;  %v515_v27 = vpack.c.bf16 %v488_v2, %v487_v6  ;;  %v705_v31 = vld [vmem:[%s1376_s5] sm:$0xff] }
  0xeb   : > { %708 = vperm.xlu0 %973, %v705_v31  }
  0xec   : > { %v489_v0 = vmax.f32 %v465_v32, 0.0 }
  0xf1   : > { %v466_v39 = vpop.f32.mrf.mxu0 }
  0xf2   : > { %v467_v43 = vadd.f32 %v466_v39, %v1265_v30  ;;  %v450_v30 = vadd.f32 %v449_v4, %v1271_v42 }
  0xf4   : > { %v490_v45 = vmax.f32 %v467_v43, 0.0  ;;  %v483_v11 = vmax.f32 %v450_v30, 0.0 }
  0xf6   : > { %v516_v47 = vpack.c.bf16 %v490_v45, %v489_v0  ;;  %v513_v16 = vpack.c.bf16 %v484_v36, %v483_v11 }
  0xf8   : > { %633 = vmatpush.bf16.msra.mxu1 %v516_v47  ;;  %920 = vmatpush.bf16.msra.mxu3 %v516_v47 }
  0xfc   : > { %634 = vmatpush.bf16.msra.mxu1 %v515_v27  ;;  %921 = vmatpush.bf16.msra.mxu3 %v515_v27 }
  0xfd   : > { %v581_v53 = vpop.permute.xlu2 %580 }
 0x100   : > { %635 = vmatpush.bf16.msra.mxu1 %v514_v10  ;;  %922 = vmatpush.bf16.msra.mxu3 %v514_v10 }
 0x104   : > { %636 = vmatpush.bf16.msra.mxu1 %v513_v16  ;;  %923 = vmatpush.bf16.msra.mxu3 %v513_v16 }
 0x105   : > { %v561_v57 = vpop.permute.xlu2 %560 }
 0x108   : > { %637 = vmatpush.bf16.msra.mxu1 %v1275_v60  ;;  %924 = vmatpush.bf16.msra.mxu3 %v1275_v60 }
 0x10c   : > { %638 = vmatpush.bf16.msra.mxu1 %v1273_v56  ;;  %925 = vmatpush.bf16.msra.mxu3 %v1273_v56 }
 0x10d   : > { %v553_v62 = vpop.permute.xlu2 %552 }
 0x10f   : > { %639 = vmatmul.bf16.vlgmr.msra.gmra.mxu1 %v909_v13  ;;  %659 = vmatmul.bf16.vlgmr.msra.gmra.mxu3 %v913_v14 }
 0x114   : > { %v577_v52 = vpop.permute.xlu1 %576 }
 0x115   : > { %v569_v59 = vpop.permute.xlu0 %568  ;;  %v549_v24 = vpop.permute.xlu2 %548 }
 0x11c   : > { %v573_v56 = vpop.permute.xlu1 %572 }
 0x11d   : > { %v557_v4 = vpop.permute.xlu0 %556  ;;  %v529_v3 = vpop.permute.xlu2 %528 }
 0x11f   : > { %644 = vmatmul.bf16.gmra.mxu1 %v910_v1  ;;  %664 = vmatmul.bf16.gmra.mxu3 %v914_v18 }
 0x124   : > { %v565_v61 = vpop.permute.xlu1 %564 }
 0x125   : > { %v537_v41 = vpop.permute.xlu0 %536 }
 0x12c   : > { %v545_v15 = vpop.permute.xlu1 %544 }
 0x12d   : > { %v533_v16 = vpop.permute.xlu0 %532 }
 0x12f   : > { %649 = vmatmul.bf16.gmra.mxu1 %v911_v19  ;;  %669 = vmatmul.bf16.gmra.mxu3 %v915_v20 }
 0x135   : > { %v541_v2 = vpop.permute.xlu1 %540 }
 0x13d   : > { %v521_v1 = vpop.permute.xlu1 %520 }
 0x13f   : > { %654 = vmatmul.bf16.gmra.mxu1 %v912_v21  ;;  %674 = vmatmul.bf16.gmra.mxu3 %v916_v22  ;;  %v525_v22 = vpop.permute.xlu2 %524 }
 0x18c   : > { %v1327_v33 = vpop.f32.mrf.mxu1 }
 0x192   : > { %v660_v37 = vpop.f32.mrf.mxu3 }
 0x193   : > { %v661_v46 = vadd.f32 %v660_v37, %v553_v62  ;;  %v641_v37 = vadd.f32 %v1327_v33, %v521_v1 }
 0x194   : > { %v1329_v38 = vpop.f32.mrf.mxu1 }
 0x195   : > { %v688_v27 = vmax.f32 %v661_v46, 0.0 }
 0x19a   : > { %v662_v42 = vpop.f32.mrf.mxu3 }
 0x19b   : > { %v663_v43 = vadd.f32 %v662_v42, %v557_v4 }
 0x19c   : > { %v645_v48 = vpop.f32.mrf.mxu1 }
 0x19d   : > { %v689_v6 = vmax.f32 %v663_v43, 0.0  ;;  %v646_v14 = vadd.f32 %v645_v48, %v529_v3 }
 0x19f   : > { %v701_v11 = vpack.c.bf16 %v689_v6, %v688_v27  ;;  %v682_v42 = vmax.f32 %v646_v14, 0.0 }
 0x1a2   : > { %v665_v49 = vpop.f32.mrf.mxu3 }
 0x1a3   : > { %v666_v32 = vadd.f32 %v665_v49, %v561_v57  ;;  %v643_v49 = vadd.f32 %v1329_v38, %v525_v22 }
 0x1a4   : > { %v647_v51 = vpop.f32.mrf.mxu1 }
 0x1a5   : > { %v690_v47 = vmax.f32 %v666_v32, 0.0  ;;  %v648_v19 = vadd.f32 %v647_v51, %v533_v16  ;;  %v696_v51 = vld [vmem:[%s1374_s3] sm:$0xf] }
 0x1aa   : > { %v667_v50 = vpop.f32.mrf.mxu3 }
 0x1ab   : > { %v668_v35 = vadd.f32 %v667_v50, %v565_v61  ;;  %v683_v50 = vmax.f32 %v648_v19, 0.0 }
 0x1ac   : > { %v650_v55 = vpop.f32.mrf.mxu1 }
 0x1ad   : > { %v691_v44 = vmax.f32 %v668_v35, 0.0  ;;  %v651_v34 = vadd.f32 %v650_v55, %v537_v41  ;;  %v698_v55 = vpack.c.bf16 %v683_v50, %v682_v42 }
 0x1af   : > { %v702_v12 = vpack.c.bf16 %v691_v44, %v690_v47  ;;  %v684_v18 = vmax.f32 %v651_v34, 0.0 }
 0x1b2   : > { %v670_v54 = vpop.f32.mrf.mxu3 }
 0x1b3   : > { %v671_v25 = vadd.f32 %v670_v54, %v569_v59  ;;  %v681_v54 = vmax.f32 %v643_v49, 0.0 }
 0x1b4   : > { %v652_v60 = vpop.f32.mrf.mxu1 }
 0x1b5   : > { %v692_v39 = vmax.f32 %v671_v25, 0.0  ;;  %v653_v36 = vadd.f32 %v652_v60, %v541_v2 }
 0x1b7   : > { %v685_v20 = vmax.f32 %v653_v36, 0.0 }
 0x1ba   : > { %v672_v58 = vpop.f32.mrf.mxu3 }
 0x1bb   : > { %v673_v17 = vadd.f32 %v672_v58, %v573_v56  ;;  %v709_v56 = vpop.permute.xlu0 %708 }
 0x1bc   : > { %v655_v7 = vpop.f32.mrf.mxu1 }
 0x1bd   : > { %v693_v40 = vmax.f32 %v673_v17, 0.0  ;;  %v656_v30 = vadd.f32 %v655_v7, %v545_v15 }
 0x1bf   : > { %v703_v0 = vpack.c.bf16 %v693_v40, %v692_v39  ;;  %v686_v13 = vmax.f32 %v656_v30, 0.0 }
 0x1c2   : > { %v675_v63 = vpop.f32.mrf.mxu3 }
 0x1c3   : > { %v676_v5 = vadd.f32 %v675_v63, %v577_v52  ;;  %v699_v52 = vpack.c.bf16 %v685_v20, %v684_v18 }
 0x1c4   : > { %v657_v45 = vpop.f32.mrf.mxu1 }
 0x1c5   : > { %v694_v26 = vmax.f32 %v676_v5, 0.0  ;;  %v658_v8 = vadd.f32 %v657_v45, %v549_v24 }
 0x1c7   : > { %v687_v10 = vmax.f32 %v658_v8, 0.0 }
 0x1c9   : > { %v700_v21 = vpack.c.bf16 %v687_v10, %v686_v13 }
 0x1ca   : > { %v677_v9 = vpop.f32.mrf.mxu3 }
 0x1cb   : > { %v678_v23 = vadd.f32 %v677_v9, %v581_v53  ;;  %v680_v53 = vmax.f32 %v641_v37, 0.0 }
 0x1cd   : > { %v695_v28 = vmax.f32 %v678_v23, 0.0  ;;  %v697_v48 = vpack.c.bf16 %v681_v54, %v680_v53 }
 0x1cf   : > { %v704_v29 = vpack.c.bf16 %v695_v28, %v694_v26 }
 0x1d1   : > { %711 = vmatpush.bf16.msrb.mxu2 %v704_v29 }
 0x1d5   : > { %712 = vmatpush.bf16.msrb.mxu2 %v703_v0 }
 0x1d9   : > { %713 = vmatpush.bf16.msrb.mxu2 %v702_v12 }
 0x1dd   : > { %714 = vmatpush.bf16.msrb.mxu2 %v701_v11 }
 0x1e1   : > { %715 = vmatpush.bf16.msrb.mxu2 %v700_v21 }
 0x1e5   : > { %716 = vmatpush.bf16.msrb.mxu2 %v699_v52 }
 0x1e9   : > { %717 = vmatpush.bf16.msrb.mxu2 %v698_v55 }
 0x1ed   : > { %718 = vmatpush.bf16.msrb.mxu2 %v697_v48 }
 0x1f0   : > { %719 = vmatmul.bf16.vlgmr.msrb.gmra.mxu2 %v696_v51 }
 0x273   : > { %v720_v33 = vpop.f32.mrf.mxu2 }
 0x274   : > { %v721_v57 = vadd.f32 %v720_v33, %v709_v56 }
 0x276   : > { %v727_v38 = vand.u32 2147483647, %v721_v57  ;;  %v724_v17 = vmax.f32 %v721_v57, 0.0  ;;  %vm725_vm3 = vcmp.ne.f32.partialorder %v721_v57, %v721_v57 }
 0x278   : > { %v728_v58 = vsub.f32 0.0, %v727_v38 }
 0x27a   : > { %v729_v59 = vmul.f32 1.442695, %v728_v58 }
 0x27b   : > { %v722_v60 = vpop.f32.mrf.mxu2 }
 0x27c   : > { %974 = vpow2.f32 %v729_v59 }
 0x282   : > { %v975_v61 = vpop.eup %974 }
 0x283   : > { %v731_v62 = vadd.f32 1.0, %v975_v61  ;;  %v734_v63 = vmul.f32 -0.5, %v975_v61  ;;  %v737_v5 = vand.u32 2147483647, %v975_v61 }
 0x285   : > { %976 = vlog2.f32 %v731_v62  ;;  %v735_v4 = vadd.f32 1.0, %v734_v63  ;;  %vm738_vm2 = vcmp.lt.f32.partialorder %v737_v5, 0.0004427343 }
 0x287   : > { %v736_v15 = vmul.f32 %v975_v61, %v735_v4 }
 0x28b   : > { %v977_v7 = vpop.eup %976 }
 0x28c   : > { %v733_v9 = vmul.f32 0.6931472, %v977_v7 }
 0x28e   : > { %v739_v23 = vsel %vm738_vm2, %v736_v15, %v733_v9 }
 0x28f   : > { %v740_v24 = vadd.f32 %v739_v23, %v724_v17 }
 0x291   : > { %v741_v25 = vsel %vm725_vm3, %v721_v57, %v740_v24 }
 0x292   : > { %v742_v26 = vadd.f32 1.0, %v741_v25 }
 0x294   : > { %743 = vst [vmem:[%s242_s13] sm:$0xff] %v742_v26 }
 0x295   : > { %1005 = shalt.err (!%p1002_p3)
}
 0x296   : > { %926 = dma.vmem_to_hbm [thread:$0]  (%p1117_p5), %s758_s14, 128, %s760_s15, %s745_s25  }
 0x297 PF: > { %p932_p4 = scmp.ge.s32.totalorder %s1040_s24, 2  ;;  %s771_s28 = sand.u32 1, %s1028_s21  }
 0x298   : > { %s772_s9 = scalar_lea.sflag [#allocation3], %s771_s28 }
 0x299   : > { %p929_p7 = pnand %p932_p4, %p1121_p6 }
 0x29b   : > { %p930_p8 = pneg %p929_p7 }
 0x29d   : > { %1023 = dma.done.wait (%p930_p8), %s772_s9, 128  }
 0x29e   : > { %1025 = vsyncadd (%p930_p8), %s772_s9, 4294967168  ;;  %p16_p9 = scmp.ge.s32.totalorder %s1104_s27, 4   ;;  %s1380_s21 = smov %s1032_s22 }
 0x29f   : > { %s1381_s22 = smov %s1036_s23  ;;  %s1382_s23 = smov %s1115_s30 }
 0x2a0   : > { %s1383_s24 = smov %s1104_s27  ;;  %18 = sbr.rel (!%p16_p9) target bundleno = 3 (0x3), region = 79 }
 0x2a5   :  { %778 = vsyncpa [#allocation3], 1 }
 0x2a6   :  { %780 = vsyncpa [#allocation3 + $0x1], 1 }

</bundles_post_ra>
